<compile_context>
chip_gen: v7x
topology: tpu7x:2x2x1
jax: 0.10.0
libtpu: 0.0.40
codegen_flags: <defaults>
</compile_context>

<pallas_src>
import math
from functools import partial

import jax
import jax.numpy as jnp
from jax.experimental import pallas as pl
from jax.experimental.pallas import tpu as pltpu


# ----------------------------- fused Pallas kernel -----------------------------

def _make_codebook_kernel(num_enc_layers, num_dec_layers, compute_unused_decodes):

    def kernel(*refs):
        it = iter(refs)
        a_ref = next(it)        # (3, N, N) bf16  per-relation normalized adjacency
        x_ref = next(it)        # (N, Din)  f32
        emb_ref = next(it)      # (K, H)    f32   VQ codebook
        enc_p = [tuple(next(it) for _ in range(4)) for _ in range(num_enc_layers)]
        if compute_unused_decodes:
            mask_ref = next(it)     # (1, K) f32   random_mcm_mask as 0/1
            dec_p = [tuple(next(it) for _ in range(4)) for _ in range(num_dec_layers)]
        h_out_ref = next(it)    # (N, H)    f32   encoder output h_m_L
        loss_ref = next(it)     # (8, 128)  f32   MSE broadcast (lane-dense scalar output)
        if compute_unused_decodes:
            pair_ref = next(it)     # (N, 2*Dout) f32  [recon(q) | recon(q_masked)]

        def hetero_fc(h, wc_ref, b_ref, fw_ref, fb_ref):
            # HeteroGraphConv(aggregate='sum') + Linear.
            # Per-relation dots accumulated in f32; leading-axis indexing of the (3,...) refs
            # is free, so there is no lane slicing / restack and A is consumed per-dot.
            h_bf = h.astype(jnp.bfloat16)
            agg = b_ref[...]                                       # (1, Hc), broadcasts over N
            for r in range(3):
                xw = jnp.dot(h_bf, wc_ref[r],
                             preferred_element_type=jnp.float32)   # (N, Hc)
                agg = agg + jnp.dot(a_ref[r], xw.astype(jnp.bfloat16),
                                    preferred_element_type=jnp.float32)
            return jnp.dot(agg.astype(jnp.bfloat16), fw_ref[...],
                           preferred_element_type=jnp.float32) + fb_ref[...]

        def batchnorm(v):
            # BatchNorm1d, training-mode batch stats, gamma=1 / beta=0 (PyTorch default init).
            mean = jnp.mean(v, axis=0, keepdims=True)
            var = jnp.mean(jnp.square(v - mean), axis=0, keepdims=True)
            return (v - mean) * jax.lax.rsqrt(var + 1e-5)          # rsqrt -> EUP slot

        # ---------------- GCN_Encoder: (conv -> fc -> relu -> bn) x L  (dropout p = 0) -------
        h = x_ref[...]
        for wc, b, fw, fb in enc_p:
            h = batchnorm(jnp.maximum(hetero_fc(h, wc, b, fw, fb), 0.0))
        h_out_ref[...] = h                                          # h_m_L

        # ---------------- VectorQuantizer ----------------------------------------------------
        e = emb_ref[...]                                            # (K, H) f32
        # F.normalize(p=2): v * 1/max(||v||, 1e-12) == v * rsqrt(max(||v||^2, 1e-24))
        xn = h * jax.lax.rsqrt(jnp.maximum(jnp.sum(h * h, axis=1, keepdims=True), 1e-24))
        en = e * jax.lax.rsqrt(jnp.maximum(jnp.sum(e * e, axis=1, keepdims=True), 1e-24))
        # d_ij = ||xn_i||^2 + ||en_j||^2 - 2 xn_i.en_j ; the ||xn_i||^2 term is constant per
        # row and cannot change the argmin, so only the (1,K) ||en_j||^2 term is kept (all f32).
        s = jax.lax.dot_general(xn, en, (((1,), (1,)), ((), ())),
                                preferred_element_type=jnp.float32)          # (N, K)
        ones_row = jnp.ones((1, en.shape[1]), jnp.float32)
        en_sq = jax.lax.dot_general(ones_row, en * en, (((1,), (1,)), ((), ())),
                                    preferred_element_type=jnp.float32)      # (1, K)
        d = en_sq - 2.0 * s
        col = jax.lax.broadcasted_iota(jnp.int32, d.shape, 1)
        d_min = jnp.min(d, axis=1, keepdims=True)
        # first index attaining the min (== torch.argmin tie behavior)
        first = jnp.min(jnp.where(d == d_min, col, jnp.int32(d.shape[1])),
                        axis=1, keepdims=True)
        onehot = (col == first).astype(jnp.float32)                 # (N, K)
        q = jnp.dot(onehot, e, preferred_element_type=jnp.float32)  # unnormalized lookup
        diff = q - h
        mse = jnp.mean(diff * diff)
        # codebook_loss = MSE(quantized, x.detach()); commitment_loss = MSE(x, quantized.detach())
        # -> identical forward value; broadcast to a full vreg for a single unmasked store.
        loss_ref[...] = jnp.full((8, 128), mse, jnp.float32)

        # ---------------- GCN_Decoder: recon + masked re-decode as ONE paired pass -----------
        if compute_unused_decodes:
            # node_mask = random_mcm_mask[idx], gathered via the already-built one-hot.
            node_mask = jnp.sum(onehot * mask_ref[...], axis=1, keepdims=True)   # (N, 1)
            q_masked = jnp.where(node_mask > 0.5, 0.0, q)           # quantized_ste fwd == q
            z = jnp.concatenate([q, q_masked], axis=1)              # (N, 2H) paired activations
            # Block-diagonal decoder weights (built once at prep time) keep the two decode
            # passes independent while every A_r @ XW dot serves both with a 2x wider RHS.
            for l, (wcp, bp, fwp, fbp) in enumerate(dec_p):
                z = hetero_fc(z, wcp, bp, fwp, fbp)
                if l < num_dec_layers - 1:
                    z = jnp.maximum(batchnorm(z), 0.0)              # per-column stats == per-pass
            pair_ref[...] = z                                       # [x_recon_vq | x_mask_recon]

    return kernel


# ------------------------------- one-time prep (outside per-forward path) -------------------

def prepare_graph(a_norm):
    """Per-graph, one-time: keep the 3 relation adjacencies on a leading axis, cast to bf16."""
    return jnp.asarray(a_norm, jnp.float32).astype(jnp.bfloat16)        # (3, N, N)


def _blockdiag(w):
    a, b = w.shape
    z = jnp.zeros((a, b), w.dtype)
    return jnp.concatenate(
        [jnp.concatenate([w, z], axis=1), jnp.concatenate([z, w], axis=1)], axis=0)


def prepare_params(params):
    """Per-parameter-set, one-time: bf16 MXU-side weights; decoder weights duplicated
    block-diagonally so the two decode passes share each aggregation matmul."""
    enc = [dict(wc=p["wc"].astype(jnp.bfloat16), b=p["b"].astype(jnp.float32),
                fw=p["fw"].astype(jnp.bfloat16), fb=p["fb"].astype(jnp.float32))
           for p in params["enc"]]
    dec = []
    for p in params["dec"]:
        wcp = jnp.stack([_blockdiag(p["wc"][r]) for r in range(3)], axis=0)    # (3, 2H, 2H)
        dec.append(dict(
            wc=wcp.astype(jnp.bfloat16),
            b=jnp.concatenate([p["b"], p["b"]], axis=1).astype(jnp.float32),   # (1, 2H)
            fw=_blockdiag(p["fw"]).astype(jnp.bfloat16),                       # (2H, 2*out)
            fb=jnp.concatenate([p["fb"], p["fb"]], axis=1).astype(jnp.float32)))
    return dict(enc=enc, dec=dec, vq_emb=params["vq_emb"].astype(jnp.float32))


# ------------------------------- JAX wrapper -------------------------------

@partial(jax.jit, static_argnames=("return_encoder_output", "compute_unused_decodes"))
def codebook_forward(prepped, a_bf16, x_input, random_mcm_mask,
                     return_encoder_output=False, compute_unused_decodes=False):
    num_enc = len(prepped["enc"])
    num_dec = len(prepped["dec"])
    n = x_input.shape[0]
    k, hidden = prepped["vq_emb"].shape
    out2 = prepped["dec"][-1]["fw"].shape[1]                 # 2 * input_dim (paired layout)

    inputs = [a_bf16, x_input.astype(jnp.float32), prepped["vq_emb"]]
    for p in prepped["enc"]:
        inputs += [p["wc"], p["b"], p["fw"], p["fb"]]
    if compute_unused_decodes:
        inputs.append(random_mcm_mask.astype(jnp.float32).reshape(1, k))
        for p in prepped["dec"]:
            inputs += [p["wc"], p["b"], p["fw"], p["fb"]]

    out_shape = [jax.ShapeDtypeStruct((n, hidden), jnp.float32),      # h_m_L
                 jax.ShapeDtypeStruct((8, 128), jnp.float32)]         # broadcast MSE
    if compute_unused_decodes:
        out_shape.append(jax.ShapeDtypeStruct((n, out2), jnp.float32))  # paired recon (unused)

    # vmem budget from the actual footprint (+ headroom for intermediates), capped at v7x's
    # 64 MiB physical VMEM.  TODO(synk): beyond that, switch to the row-tiled streaming grid.
    def nbytes(shape, dtype):
        return math.prod(shape) * jnp.dtype(dtype).itemsize
    footprint = (sum(nbytes(t.shape, t.dtype) for t in inputs)
                 + sum(nbytes(s.shape, s.dtype) for s in out_shape))
    vmem_limit = int(min(max(4 * footprint + (4 << 20), 16 << 20), 64 << 20))

    vmem = pl.BlockSpec(memory_space=pltpu.MemorySpace.VMEM)
    outs = pl.pallas_call(
        _make_codebook_kernel(num_enc, num_dec, compute_unused_decodes),
        out_shape=tuple(out_shape),
        in_specs=[vmem] * len(inputs),
        out_specs=tuple([vmem] * len(out_shape)),
        compiler_params=pltpu.CompilerParams(vmem_limit_bytes=vmem_limit),
    )(*inputs)

    h_m_L = outs[0]
    mse = outs[1][0, 0]
    zero = jnp.float32(0.0)
    # recon_loss / mask_loss_sce are hard-coded to 0.0 in the reference (empty try blocks).
    if return_encoder_output:
        return zero, mse, mse, zero, h_m_L
    return zero, mse, mse, zero


# ------------------------------- params / graph -------------------------------

def init_params(key, input_dim, hidden_dim, num_layers, num_embeddings):
    keys = iter(jax.random.split(key, 12 * num_layers + 2))

    def lin(k_, i, o):
        s = 1.0 / jnp.sqrt(jnp.float32(i))
        return jax.random.uniform(k_, (i, o), jnp.float32, -s, s)

    enc = []
    d_in = input_dim
    for _ in range(num_layers):
        enc.append(dict(
            # 3 relation weights on a leading axis: (3, Din, H)
            wc=jnp.stack([lin(next(keys), d_in, hidden_dim) for _ in range(3)], axis=0),
            b=jax.random.uniform(next(keys), (1, hidden_dim), jnp.float32, -0.1, 0.1),  # sum of 3 conv biases
            fw=lin(next(keys), hidden_dim, hidden_dim),
            fb=jax.random.uniform(next(keys), (1, hidden_dim), jnp.float32, -0.1, 0.1),
        ))
        d_in = hidden_dim
    dec = []
    for l in range(num_layers):
        out_d = input_dim if l == num_layers - 1 else hidden_dim
        dec.append(dict(
            wc=jnp.stack([lin(next(keys), hidden_dim, hidden_dim) for _ in range(3)], axis=0),
            b=jax.random.uniform(next(keys), (1, hidden_dim), jnp.float32, -0.1, 0.1),
            fw=lin(next(keys), hidden_dim, out_d),
            fb=jax.random.uniform(next(keys), (1, out_d), jnp.float32, -0.1, 0.1),
        ))
    vq_emb = jax.random.uniform(next(keys), (num_embeddings, hidden_dim), jnp.float32,
                                -1.0 / num_embeddings, 1.0 / num_embeddings)
    return dict(enc=enc, dec=dec, vq_emb=vq_emb)


def build_graph(key, n, num_rel=3, p_edge=0.3):
    # dense random multi-relation graph, pre-normalized like DGL GraphConv(norm='both')
    a = (jax.random.uniform(key, (num_rel, n, n)) < p_edge).astype(jnp.float32)  # A[r, dst, src]
    out_deg = jnp.clip(jnp.sum(a, axis=1), 1.0, None)
    in_deg = jnp.clip(jnp.sum(a, axis=2), 1.0, None)
    return a * (in_deg[:, :, None] ** -0.5) * (out_deg[:, None, :] ** -0.5)


if __name__ == "__main__":
    key = jax.random.PRNGKey(0)
    k_graph, k_feat, k_param, k_mask = jax.random.split(key, 4)

    cfg = dict(input_dim=32, prot_hidden_dim=32, prot_num_layers=2,
               num_embeddings=16, commitment_cost=0.25, dropout_ratio=0.0)
    N = 16  # amino-acid nodes in the batched graph

    a_norm = build_graph(k_graph, N)                                   # (3, N, N) f32
    x = jax.random.normal(k_feat, (N, cfg["input_dim"]), jnp.float32)
    params = init_params(k_param, cfg["input_dim"], cfg["prot_hidden_dim"],
                         cfg["prot_num_layers"], cfg["num_embeddings"])
    random_mcm_mask = jax.random.uniform(k_mask, (cfg["num_embeddings"],)) < 0.15

    # One-time prep (hoisted out of the per-forward path): bf16 adjacency layout and
    # bf16 / block-diagonal-paired weights are built once and reused by every forward.
    a_bf = jax.block_until_ready(prepare_graph(a_norm))
    prepped = jax.block_until_ready(prepare_params(params))

    # Fast path (default): the reference's unused decoder reconstructions are skipped;
    # returned losses / h_m_L are identical.
    out_fast = codebook_forward(prepped, a_bf, x, random_mcm_mask,
                                return_encoder_output=True)
    jax.block_until_ready(out_fast)

    # Reference-parity path: both decoder passes also run, fused into one paired decode,
    # still a single kernel launch.
    out_full = codebook_forward(prepped, a_bf, x, random_mcm_mask,
                                return_encoder_output=True, compute_unused_decodes=True)
    jax.block_until_ready(out_full)

    print("KERNEL_OK")
</pallas_src>

<mosaic_0001>
module attributes {stable_mosaic.version = 11 : i64} {
  func.func @kernel(%arg0: memref<3x16x16xbf16, #tpu.memory_space<vmem>>, %arg1: memref<16x32xf32, #tpu.memory_space<vmem>>, %arg2: memref<16x32xf32, #tpu.memory_space<vmem>>, %arg3: memref<3x32x32xbf16, #tpu.memory_space<vmem>>, %arg4: memref<1x32xf32, #tpu.memory_space<vmem>>, %arg5: memref<32x32xbf16, #tpu.memory_space<vmem>>, %arg6: memref<1x32xf32, #tpu.memory_space<vmem>>, %arg7: memref<3x32x32xbf16, #tpu.memory_space<vmem>>, %arg8: memref<1x32xf32, #tpu.memory_space<vmem>>, %arg9: memref<32x32xbf16, #tpu.memory_space<vmem>>, %arg10: memref<1x32xf32, #tpu.memory_space<vmem>>, %arg11: memref<16x32xf32, #tpu.memory_space<vmem>>, %arg12: memref<8x128xf32, #tpu.memory_space<vmem>>) attributes {dimension_semantics = [], scalar_prefetch = 0 : i64, scratch_operands = 0 : i64, tpu.core_type = #tpu.core_type<tc>} {
    %c0 = arith.constant 0 : index
    %c0_0 = arith.constant 0 : index
    %0 = vector.load %arg1[%c0, %c0_0] : memref<16x32xf32, #tpu.memory_space<vmem>>, vector<16x32xf32>
    %1 = arith.truncf %0 : vector<16x32xf32> to vector<16x32xbf16>
    %c0_1 = arith.constant 0 : index
    %c0_2 = arith.constant 0 : index
    %2 = vector.load %arg4[%c0_1, %c0_2] : memref<1x32xf32, #tpu.memory_space<vmem>>, vector<1x32xf32>
    %c0_3 = arith.constant 0 : index
    %c0_4 = arith.constant 0 : index
    %c0_5 = arith.constant 0 : index
    %3 = vector.load %arg3[%c0_3, %c0_4, %c0_5] : memref<3x32x32xbf16, #tpu.memory_space<vmem>>, vector<1x32x32xbf16>
    %4 = vector.shape_cast %3 : vector<1x32x32xbf16> to vector<32x32xbf16>
    %cst = arith.constant dense<0.000000e+00> : vector<16x32xf32>
    %5 = tpu.matmul %1, %4, %cst {dimension_numbers = #tpu.dot_dimension_numbers<[1], [0], [0], [1], [0, 0, 1, 1], [], []>} : vector<16x32xbf16>, vector<32x32xbf16>, vector<16x32xf32> -> vector<16x32xf32>
    %c0_6 = arith.constant 0 : index
    %c0_7 = arith.constant 0 : index
    %c0_8 = arith.constant 0 : index
    %6 = vector.load %arg0[%c0_6, %c0_7, %c0_8] : memref<3x16x16xbf16, #tpu.memory_space<vmem>>, vector<1x16x16xbf16>
    %7 = vector.shape_cast %6 : vector<1x16x16xbf16> to vector<16x16xbf16>
    %8 = arith.truncf %5 : vector<16x32xf32> to vector<16x32xbf16>
    %cst_9 = arith.constant dense<0.000000e+00> : vector<16x32xf32>
    %9 = tpu.matmul %7, %8, %cst_9 {dimension_numbers = #tpu.dot_dimension_numbers<[1], [0], [0], [1], [0, 0, 1, 1], [], []>} : vector<16x16xbf16>, vector<16x32xbf16>, vector<16x32xf32> -> vector<16x32xf32>
    %10 = vector.broadcast %2 : vector<1x32xf32> to vector<16x32xf32>
    %11 = arith.addf %10, %9 : vector<16x32xf32>
    %c1 = arith.constant 1 : index
    %c0_10 = arith.constant 0 : index
    %c0_11 = arith.constant 0 : index
    %12 = vector.load %arg3[%c1, %c0_10, %c0_11] : memref<3x32x32xbf16, #tpu.memory_space<vmem>>, vector<1x32x32xbf16>
    %13 = vector.shape_cast %12 : vector<1x32x32xbf16> to vector<32x32xbf16>
    %cst_12 = arith.constant dense<0.000000e+00> : vector<16x32xf32>
    %14 = tpu.matmul %1, %13, %cst_12 {dimension_numbers = #tpu.dot_dimension_numbers<[1], [0], [0], [1], [0, 0, 1, 1], [], []>} : vector<16x32xbf16>, vector<32x32xbf16>, vector<16x32xf32> -> vector<16x32xf32>
    %c1_13 = arith.constant 1 : index
    %c0_14 = arith.constant 0 : index
    %c0_15 = arith.constant 0 : index
    %15 = vector.load %arg0[%c1_13, %c0_14, %c0_15] : memref<3x16x16xbf16, #tpu.memory_space<vmem>>, vector<1x16x16xbf16>
    %16 = vector.shape_cast %15 : vector<1x16x16xbf16> to vector<16x16xbf16>
    %17 = arith.truncf %14 : vector<16x32xf32> to vector<16x32xbf16>
    %cst_16 = arith.constant dense<0.000000e+00> : vector<16x32xf32>
    %18 = tpu.matmul %16, %17, %cst_16 {dimension_numbers = #tpu.dot_dimension_numbers<[1], [0], [0], [1], [0, 0, 1, 1], [], []>} : vector<16x16xbf16>, vector<16x32xbf16>, vector<16x32xf32> -> vector<16x32xf32>
    %19 = arith.addf %11, %18 : vector<16x32xf32>
    %c2 = arith.constant 2 : index
    %c0_17 = arith.constant 0 : index
    %c0_18 = arith.constant 0 : index
    %20 = vector.load %arg3[%c2, %c0_17, %c0_18] : memref<3x32x32xbf16, #tpu.memory_space<vmem>>, vector<1x32x32xbf16>
    %21 = vector.shape_cast %20 : vector<1x32x32xbf16> to vector<32x32xbf16>
    %cst_19 = arith.constant dense<0.000000e+00> : vector<16x32xf32>
    %22 = tpu.matmul %1, %21, %cst_19 {dimension_numbers = #tpu.dot_dimension_numbers<[1], [0], [0], [1], [0, 0, 1, 1], [], []>} : vector<16x32xbf16>, vector<32x32xbf16>, vector<16x32xf32> -> vector<16x32xf32>
    %c2_20 = arith.constant 2 : index
    %c0_21 = arith.constant 0 : index
    %c0_22 = arith.constant 0 : index
    %23 = vector.load %arg0[%c2_20, %c0_21, %c0_22] : memref<3x16x16xbf16, #tpu.memory_space<vmem>>, vector<1x16x16xbf16>
    %24 = vector.shape_cast %23 : vector<1x16x16xbf16> to vector<16x16xbf16>
    %25 = arith.truncf %22 : vector<16x32xf32> to vector<16x32xbf16>
    %cst_23 = arith.constant dense<0.000000e+00> : vector<16x32xf32>
    %26 = tpu.matmul %24, %25, %cst_23 {dimension_numbers = #tpu.dot_dimension_numbers<[1], [0], [0], [1], [0, 0, 1, 1], [], []>} : vector<16x16xbf16>, vector<16x32xbf16>, vector<16x32xf32> -> vector<16x32xf32>
    %27 = arith.addf %19, %26 : vector<16x32xf32>
    %28 = arith.truncf %27 : vector<16x32xf32> to vector<16x32xbf16>
    %c0_24 = arith.constant 0 : index
    %c0_25 = arith.constant 0 : index
    %29 = vector.load %arg5[%c0_24, %c0_25] : memref<32x32xbf16, #tpu.memory_space<vmem>>, vector<32x32xbf16>
    %cst_26 = arith.constant dense<0.000000e+00> : vector<16x32xf32>
    %30 = tpu.matmul %28, %29, %cst_26 {dimension_numbers = #tpu.dot_dimension_numbers<[1], [0], [0], [1], [0, 0, 1, 1], [], []>} : vector<16x32xbf16>, vector<32x32xbf16>, vector<16x32xf32> -> vector<16x32xf32>
    %c0_27 = arith.constant 0 : index
    %c0_28 = arith.constant 0 : index
    %31 = vector.load %arg6[%c0_27, %c0_28] : memref<1x32xf32, #tpu.memory_space<vmem>>, vector<1x32xf32>
    %32 = vector.broadcast %31 : vector<1x32xf32> to vector<16x32xf32>
    %33 = arith.addf %30, %32 : vector<16x32xf32>
    %cst_29 = arith.constant 0.000000e+00 : f32
    %34 = vector.broadcast %cst_29 : f32 to vector<16x32xf32>
    %35 = arith.maximumf %33, %34 : vector<16x32xf32>
    %cst_30 = arith.constant dense<0.000000e+00> : vector<32xf32>
    %36 = vector.multi_reduction <add>, %35, %cst_30 [0] : vector<16x32xf32> to vector<32xf32>
    %37 = vector.shape_cast %36 : vector<32xf32> to vector<1x32xf32>
    %cst_31 = arith.constant 1.600000e+01 : f32
    %38 = vector.broadcast %cst_31 : f32 to vector<1x32xf32>
    %39 = arith.divf %37, %38 : vector<1x32xf32>
    %40 = vector.broadcast %39 : vector<1x32xf32> to vector<16x32xf32>
    %41 = arith.subf %35, %40 : vector<16x32xf32>
    %42 = arith.mulf %41, %41 : vector<16x32xf32>
    %cst_32 = arith.constant dense<0.000000e+00> : vector<32xf32>
    %43 = vector.multi_reduction <add>, %42, %cst_32 [0] : vector<16x32xf32> to vector<32xf32>
    %44 = vector.shape_cast %43 : vector<32xf32> to vector<1x32xf32>
    %cst_33 = arith.constant 1.600000e+01 : f32
    %45 = vector.broadcast %cst_33 : f32 to vector<1x32xf32>
    %46 = arith.divf %44, %45 : vector<1x32xf32>
    %47 = vector.broadcast %39 : vector<1x32xf32> to vector<16x32xf32>
    %48 = arith.subf %35, %47 : vector<16x32xf32>
    %cst_34 = arith.constant 9.99999974E-6 : f32
    %49 = vector.broadcast %cst_34 : f32 to vector<1x32xf32>
    %50 = arith.addf %46, %49 : vector<1x32xf32>
    %51 = math.rsqrt %50 : vector<1x32xf32>
    %52 = vector.broadcast %51 : vector<1x32xf32> to vector<16x32xf32>
    %53 = arith.mulf %48, %52 : vector<16x32xf32>
    %54 = arith.truncf %53 : vector<16x32xf32> to vector<16x32xbf16>
    %c0_35 = arith.constant 0 : index
    %c0_36 = arith.constant 0 : index
    %55 = vector.load %arg8[%c0_35, %c0_36] : memref<1x32xf32, #tpu.memory_space<vmem>>, vector<1x32xf32>
    %c0_37 = arith.constant 0 : index
    %c0_38 = arith.constant 0 : index
    %c0_39 = arith.constant 0 : index
    %56 = vector.load %arg7[%c0_37, %c0_38, %c0_39] : memref<3x32x32xbf16, #tpu.memory_space<vmem>>, vector<1x32x32xbf16>
    %57 = vector.shape_cast %56 : vector<1x32x32xbf16> to vector<32x32xbf16>
    %cst_40 = arith.constant dense<0.000000e+00> : vector<16x32xf32>
    %58 = tpu.matmul %54, %57, %cst_40 {dimension_numbers = #tpu.dot_dimension_numbers<[1], [0], [0], [1], [0, 0, 1, 1], [], []>} : vector<16x32xbf16>, vector<32x32xbf16>, vector<16x32xf32> -> vector<16x32xf32>
    %c0_41 = arith.constant 0 : index
    %c0_42 = arith.constant 0 : index
    %c0_43 = arith.constant 0 : index
    %59 = vector.load %arg0[%c0_41, %c0_42, %c0_43] : memref<3x16x16xbf16, #tpu.memory_space<vmem>>, vector<1x16x16xbf16>
    %60 = vector.shape_cast %59 : vector<1x16x16xbf16> to vector<16x16xbf16>
    %61 = arith.truncf %58 : vector<16x32xf32> to vector<16x32xbf16>
    %cst_44 = arith.constant dense<0.000000e+00> : vector<16x32xf32>
    %62 = tpu.matmul %60, %61, %cst_44 {dimension_numbers = #tpu.dot_dimension_numbers<[1], [0], [0], [1], [0, 0, 1, 1], [], []>} : vector<16x16xbf16>, vector<16x32xbf16>, vector<16x32xf32> -> vector<16x32xf32>
    %63 = vector.broadcast %55 : vector<1x32xf32> to vector<16x32xf32>
    %64 = arith.addf %63, %62 : vector<16x32xf32>
    %c1_45 = arith.constant 1 : index
    %c0_46 = arith.constant 0 : index
    %c0_47 = arith.constant 0 : index
    %65 = vector.load %arg7[%c1_45, %c0_46, %c0_47] : memref<3x32x32xbf16, #tpu.memory_space<vmem>>, vector<1x32x32xbf16>
    %66 = vector.shape_cast %65 : vector<1x32x32xbf16> to vector<32x32xbf16>
    %cst_48 = arith.constant dense<0.000000e+00> : vector<16x32xf32>
    %67 = tpu.matmul %54, %66, %cst_48 {dimension_numbers = #tpu.dot_dimension_numbers<[1], [0], [0], [1], [0, 0, 1, 1], [], []>} : vector<16x32xbf16>, vector<32x32xbf16>, vector<16x32xf32> -> vector<16x32xf32>
    %c1_49 = arith.constant 1 : index
    %c0_50 = arith.constant 0 : index
    %c0_51 = arith.constant 0 : index
    %68 = vector.load %arg0[%c1_49, %c0_50, %c0_51] : memref<3x16x16xbf16, #tpu.memory_space<vmem>>, vector<1x16x16xbf16>
    %69 = vector.shape_cast %68 : vector<1x16x16xbf16> to vector<16x16xbf16>
    %70 = arith.truncf %67 : vector<16x32xf32> to vector<16x32xbf16>
    %cst_52 = arith.constant dense<0.000000e+00> : vector<16x32xf32>
    %71 = tpu.matmul %69, %70, %cst_52 {dimension_numbers = #tpu.dot_dimension_numbers<[1], [0], [0], [1], [0, 0, 1, 1], [], []>} : vector<16x16xbf16>, vector<16x32xbf16>, vector<16x32xf32> -> vector<16x32xf32>
    %72 = arith.addf %64, %71 : vector<16x32xf32>
    %c2_53 = arith.constant 2 : index
    %c0_54 = arith.constant 0 : index
    %c0_55 = arith.constant 0 : index
    %73 = vector.load %arg7[%c2_53, %c0_54, %c0_55] : memref<3x32x32xbf16, #tpu.memory_space<vmem>>, vector<1x32x32xbf16>
    %74 = vector.shape_cast %73 : vector<1x32x32xbf16> to vector<32x32xbf16>
    %cst_56 = arith.constant dense<0.000000e+00> : vector<16x32xf32>
    %75 = tpu.matmul %54, %74, %cst_56 {dimension_numbers = #tpu.dot_dimension_numbers<[1], [0], [0], [1], [0, 0, 1, 1], [], []>} : vector<16x32xbf16>, vector<32x32xbf16>, vector<16x32xf32> -> vector<16x32xf32>
    %c2_57 = arith.constant 2 : index
    %c0_58 = arith.constant 0 : index
    %c0_59 = arith.constant 0 : index
    %76 = vector.load %arg0[%c2_57, %c0_58, %c0_59] : memref<3x16x16xbf16, #tpu.memory_space<vmem>>, vector<1x16x16xbf16>
    %77 = vector.shape_cast %76 : vector<1x16x16xbf16> to vector<16x16xbf16>
    %78 = arith.truncf %75 : vector<16x32xf32> to vector<16x32xbf16>
    %cst_60 = arith.constant dense<0.000000e+00> : vector<16x32xf32>
    %79 = tpu.matmul %77, %78, %cst_60 {dimension_numbers = #tpu.dot_dimension_numbers<[1], [0], [0], [1], [0, 0, 1, 1], [], []>} : vector<16x16xbf16>, vector<16x32xbf16>, vector<16x32xf32> -> vector<16x32xf32>
    %80 = arith.addf %72, %79 : vector<16x32xf32>
    %81 = arith.truncf %80 : vector<16x32xf32> to vector<16x32xbf16>
    %c0_61 = arith.constant 0 : index
    %c0_62 = arith.constant 0 : index
    %82 = vector.load %arg9[%c0_61, %c0_62] : memref<32x32xbf16, #tpu.memory_space<vmem>>, vector<32x32xbf16>
    %cst_63 = arith.constant dense<0.000000e+00> : vector<16x32xf32>
    %83 = tpu.matmul %81, %82, %cst_63 {dimension_numbers = #tpu.dot_dimension_numbers<[1], [0], [0], [1], [0, 0, 1, 1], [], []>} : vector<16x32xbf16>, vector<32x32xbf16>, vector<16x32xf32> -> vector<16x32xf32>
    %c0_64 = arith.constant 0 : index
    %c0_65 = arith.constant 0 : index
    %84 = vector.load %arg10[%c0_64, %c0_65] : memref<1x32xf32, #tpu.memory_space<vmem>>, vector<1x32xf32>
    %85 = vector.broadcast %84 : vector<1x32xf32> to vector<16x32xf32>
    %86 = arith.addf %83, %85 : vector<16x32xf32>
    %cst_66 = arith.constant 0.000000e+00 : f32
    %87 = vector.broadcast %cst_66 : f32 to vector<16x32xf32>
    %88 = arith.maximumf %86, %87 : vector<16x32xf32>
    %cst_67 = arith.constant dense<0.000000e+00> : vector<32xf32>
    %89 = vector.multi_reduction <add>, %88, %cst_67 [0] : vector<16x32xf32> to vector<32xf32>
    %90 = vector.shape_cast %89 : vector<32xf32> to vector<1x32xf32>
    %cst_68 = arith.constant 1.600000e+01 : f32
    %91 = vector.broadcast %cst_68 : f32 to vector<1x32xf32>
    %92 = arith.divf %90, %91 : vector<1x32xf32>
    %93 = vector.broadcast %92 : vector<1x32xf32> to vector<16x32xf32>
    %94 = arith.subf %88, %93 : vector<16x32xf32>
    %95 = arith.mulf %94, %94 : vector<16x32xf32>
    %cst_69 = arith.constant dense<0.000000e+00> : vector<32xf32>
    %96 = vector.multi_reduction <add>, %95, %cst_69 [0] : vector<16x32xf32> to vector<32xf32>
    %97 = vector.shape_cast %96 : vector<32xf32> to vector<1x32xf32>
    %cst_70 = arith.constant 1.600000e+01 : f32
    %98 = vector.broadcast %cst_70 : f32 to vector<1x32xf32>
    %99 = arith.divf %97, %98 : vector<1x32xf32>
    %100 = vector.broadcast %92 : vector<1x32xf32> to vector<16x32xf32>
    %101 = arith.subf %88, %100 : vector<16x32xf32>
    %cst_71 = arith.constant 9.99999974E-6 : f32
    %102 = vector.broadcast %cst_71 : f32 to vector<1x32xf32>
    %103 = arith.addf %99, %102 : vector<1x32xf32>
    %104 = math.rsqrt %103 : vector<1x32xf32>
    %105 = vector.broadcast %104 : vector<1x32xf32> to vector<16x32xf32>
    %106 = arith.mulf %101, %105 : vector<16x32xf32>
    %c0_72 = arith.constant 0 : index
    %c0_73 = arith.constant 0 : index
    %107 = vector.load %arg11[%c0_72, %c0_73] : memref<16x32xf32, #tpu.memory_space<vmem>>, vector<16x32xf32>
    tpu.vector_store %arg11[%c0_72, %c0_73], %106 {strides = array<i32>} : memref<16x32xf32, #tpu.memory_space<vmem>>, vector<16x32xf32>,
    %c0_74 = arith.constant 0 : index
    %c0_75 = arith.constant 0 : index
    %108 = vector.load %arg2[%c0_74, %c0_75] : memref<16x32xf32, #tpu.memory_space<vmem>>, vector<16x32xf32>
    %109 = arith.mulf %106, %106 : vector<16x32xf32>
    %cst_76 = arith.constant dense<0.000000e+00> : vector<16xf32>
    %110 = vector.multi_reduction <add>, %109, %cst_76 [1] : vector<16x32xf32> to vector<16xf32>
    %111 = vector.shape_cast %110 : vector<16xf32> to vector<16x1xf32>
    %cst_77 = arith.constant 1.000000e-24 : f32
    %112 = vector.broadcast %cst_77 : f32 to vector<16x1xf32>
    %113 = arith.maximumf %111, %112 : vector<16x1xf32>
    %114 = math.rsqrt %113 : vector<16x1xf32>
    %115 = vector.broadcast %114 : vector<16x1xf32> to vector<16x32xf32>
    %116 = arith.mulf %106, %115 : vector<16x32xf32>
    %117 = arith.mulf %108, %108 : vector<16x32xf32>
    %cst_78 = arith.constant dense<0.000000e+00> : vector<16xf32>
    %118 = vector.multi_reduction <add>, %117, %cst_78 [1] : vector<16x32xf32> to vector<16xf32>
    %119 = vector.shape_cast %118 : vector<16xf32> to vector<16x1xf32>
    %cst_79 = arith.constant 1.000000e-24 : f32
    %120 = vector.broadcast %cst_79 : f32 to vector<16x1xf32>
    %121 = arith.maximumf %119, %120 : vector<16x1xf32>
    %122 = math.rsqrt %121 : vector<16x1xf32>
    %123 = vector.broadcast %122 : vector<16x1xf32> to vector<16x32xf32>
    %124 = arith.mulf %108, %123 : vector<16x32xf32>
    %cst_80 = arith.constant dense<0.000000e+00> : vector<16x16xf32>
    %125 = tpu.matmul %116, %124, %cst_80 {dimension_numbers = #tpu.dot_dimension_numbers<[1], [1], [0], [0], [0, 0, 1, 0], [], []>} : vector<16x32xf32>, vector<16x32xf32>, vector<16x16xf32> -> vector<16x16xf32>
    %cst_81 = arith.constant 1.000000e+00 : f32
    %126 = vector.broadcast %cst_81 : f32 to vector<1x32xf32>
    %127 = arith.mulf %124, %124 : vector<16x32xf32>
    %cst_82 = arith.constant dense<0.000000e+00> : vector<1x16xf32>
    %128 = tpu.matmul %126, %127, %cst_82 {dimension_numbers = #tpu.dot_dimension_numbers<[1], [1], [0], [0], [0, 0, 1, 0], [], []>} : vector<1x32xf32>, vector<16x32xf32>, vector<1x16xf32> -> vector<1x16xf32>
    %cst_83 = arith.constant 2.000000e+00 : f32
    %129 = vector.broadcast %cst_83 : f32 to vector<16x16xf32>
    %130 = arith.mulf %129, %125 : vector<16x16xf32>
    %131 = vector.broadcast %128 : vector<1x16xf32> to vector<16x16xf32>
    %132 = arith.subf %131, %130 : vector<16x16xf32>
    %133 = tpu.iota {dimensions = array<i32: 1>} : vector<16x16xi32>
    %cst_84 = arith.constant dense<0x7F800000> : vector<16xf32>
    %134 = vector.multi_reduction <minimumf>, %132, %cst_84 [1] : vector<16x16xf32> to vector<16xf32>
    %135 = vector.shape_cast %134 : vector<16xf32> to vector<16x1xf32>
    %136 = vector.broadcast %135 : vector<16x1xf32> to vector<16x16xf32>
    %137 = arith.cmpf oeq, %132, %136 : vector<16x16xf32>
    %c16_i32 = arith.constant 16 : i32
    %138 = vector.broadcast %c16_i32 : i32 to vector<16x16xi32>
    %139 = arith.select %137, %133, %138 : vector<16x16xi1>, vector<16x16xi32>
    %cst_85 = arith.constant dense<2147483647> : vector<16xi32>
    %140 = vector.multi_reduction <minsi>, %139, %cst_85 [1] : vector<16x16xi32> to vector<16xi32>
    %141 = vector.shape_cast %140 : vector<16xi32> to vector<16x1xi32>
    %142 = vector.broadcast %141 : vector<16x1xi32> to vector<16x16xi32>
    %143 = arith.cmpi eq, %133, %142 : vector<16x16xi32>
    %144 = arith.extui %143 : vector<16x16xi1> to vector<16x16xi32>
    %145 = arith.sitofp %144 : vector<16x16xi32> to vector<16x16xf32>
    %cst_86 = arith.constant dense<0.000000e+00> : vector<16x32xf32>
    %146 = tpu.matmul %145, %108, %cst_86 {dimension_numbers = #tpu.dot_dimension_numbers<[1], [0], [0], [1], [0, 0, 1, 1], [], []>} : vector<16x16xf32>, vector<16x32xf32>, vector<16x32xf32> -> vector<16x32xf32>
    %147 = arith.subf %146, %106 : vector<16x32xf32>
    %148 = arith.mulf %147, %147 : vector<16x32xf32>
    %149 = vector.shape_cast %148 : vector<16x32xf32> to vector<1x16x32xf32>
    %cst_87 = arith.constant dense<0.000000e+00> : vector<1xf32>
    %150 = vector.multi_reduction <add>, %149, %cst_87 [1, 2] : vector<1x16x32xf32> to vector<1xf32>
    %151 = vector.shape_cast %150 : vector<1xf32> to vector<1x1x1xf32>
    %152 = vector.extract %151[0, 0, 0] : f32 from vector<1x1x1xf32>
    %cst_88 = arith.constant 5.120000e+02 : f32
    %153 = arith.divf %152, %cst_88 : f32
    %154 = vector.broadcast %153 : f32 to vector<8x128xf32>
    %c0_89 = arith.constant 0 : index
    %c0_90 = arith.constant 0 : index
    %155 = vector.load %arg12[%c0_89, %c0_90] : memref<8x128xf32, #tpu.memory_space<vmem>>, vector<8x128xf32>
    tpu.vector_store %arg12[%c0_89, %c0_90], %154 {strides = array<i32>} : memref<8x128xf32, #tpu.memory_space<vmem>>, vector<8x128xf32>,
    return
  }
}

</mosaic_0001>

<bundles_post_ra>
// kernel: codebook_forward.1
= control target key start
LH: loop header
LB: loop body
LE: loop exit
PB: predicated region body
PF: predicated region fallthrough
CT: control target
= control target key end

     0   :  { %18 = vsyncpa [#allocation3], 0  ;;  %s2179_s0 = inlined_call_operand.vmem [shape: bf16[3,16,16], index: 0, kind: input, shape index: {}]   ;;  %s2180_s1 = inlined_call_operand.hbm [shape: f32[16,32], index: 1, kind: input, shape index: {}]   ;;  %s2181_s2 = inlined_call_operand.hbm [shape: f32[16,32], index: 2, kind: input, shape index: {}]   ;;  %s2182_s3 = inlined_call_operand.hbm [shape: bf16[3,32,32], index: 3, kind: input, shape index: {}]   ;;  %s2183_s4 = inlined_call_operand.vmem [shape: f32[1,32], index: 4, kind: input, shape index: {}]   ;;  %s2184_s5 = inlined_call_operand.hbm [shape: bf16[32,32], index: 5, kind: input, shape index: {}]   ;;  %s2185_s6 = inlined_call_operand.vmem [shape: f32[1,32], index: 6, kind: input, shape index: {}]   ;;  %s2186_s7 = inlined_call_operand.hbm [shape: bf16[3,32,32], index: 7, kind: input, shape index: {}]   ;;  %s2187_s8 = inlined_call_operand.vmem [shape: f32[1,32], index: 8, kind: input, shape index: {}]   ;;  %s2188_s9 = inlined_call_operand.hbm [shape: bf16[32,32], index: 9, kind: input, shape index: {}]   ;;  %s2189_s10 = inlined_call_operand.vmem [shape: f32[1,32], index: 10, kind: input, shape index: {}]   ;;  %s2190_s11 = inlined_call_operand.hbm [shape: f32[16,32], index: 11, kind: output, shape index: {0}]   ;;  %s2191_s12 = inlined_call_operand.vmem [shape: f32[8,128], index: 12, kind: output, shape index: {1}]  }
   0x1   :  { %19 = vsyncpa [#allocation6], 0 }
   0x2   :  { %20 = vsyncpa [#allocation9], 0 }
   0x3   :  { %21 = vsyncpa [#allocation12], 0 }
   0x4   :  { %22 = vsyncpa [#allocation4], 0  ;;  %s1837_s21 = smov [#allocation5]   ;;  %s1673_s25 = scalar_lea.hbm %s2181_s2, 256 }
   0x5   :  { %s42_s22 = sshll.u32 %s1837_s21, 4  ;;  %p1674_p0 = scmp.ne.s32.totalorder %s2181_s2, %s1673_s25  ;;  %s43_s22 = int_to_ptr.vmem [resolvable:$true] %s42_s22 }
   0x6   :  { %p1677_p1 = scmp.lt.u32.totalorder %s1673_s25, %s2181_s2 }
   0x8   :  { %p1679_p2 = pnand %p1677_p1, %p1674_p0 }
   0xa   :  { %1682 = shalt.err (!%p1679_p2)
}
   0xb   :  { %s1683_s30 = scalar_lea.vmem %s43_s22, 256  ;;  %p1688_p4 = scmp.lt.s32.totalorder %s43_s22, %s43_s22 }
   0xc   :  { %p1684_p3 = scmp.ne.s32.totalorder %s43_s22, %s1683_s30  ;;  %p1689_p5 = scmp.lt.s32.totalorder %s1683_s30, %s1683_s30 }
   0xe   :  { %p1690_p6 = por %p1689_p5, %p1688_p4 }
  0x10   :  { %p1691_p7 = pnand %p1690_p6, %p1684_p3 }
  0x12   :  { %1694 = shalt.err (!%p1691_p7)
}
  0x13   :  { %s1838_s13 = smov 128   ;;  %s1839_s14 = smov 8  }
  0x14   :  { %48 = dma.hbm_to_vmem [thread:$0]  %s2181_s2, 256, %s43_s22, [#allocation6], %s1838_s13, %s1838_s13, %s1839_s14  }
  0x15   :  { %s1840_s17 = smov [#allocation8]   ;;  %s1841_s19 = smov [#allocation2]  }
  0x16   :  { %s68_s18 = sshll.u32 %s1840_s17, 4  ;;  %s30_s20 = sshll.u32 %s1841_s19, 4  ;;  %s69_s18 = int_to_ptr.vmem [resolvable:$true] %s68_s18  ;;  %s31_s20 = int_to_ptr.vmem [resolvable:$true] %s30_s20 }
  0x17   :  { %s1695_s24 = scalar_lea.hbm %s2184_s5, 256 }
  0x18   :  { %p1696_p8 = scmp.ne.s32.totalorder %s2184_s5, %s1695_s24  ;;  %p1699_p9 = scmp.lt.u32.totalorder %s1695_s24, %s2184_s5 }
  0x1a   :  { %p1701_p10 = pnand %p1699_p9, %p1696_p8 }
  0x1c   :  { %1704 = shalt.err (!%p1701_p10)
}
  0x1d   :  { %s1705_s2 = scalar_lea.vmem %s69_s18, 256  ;;  %p1710_p12 = scmp.lt.s32.totalorder %s69_s18, %s69_s18 }
  0x1e   :  { %p1706_p11 = scmp.ne.s32.totalorder %s69_s18, %s1705_s2  ;;  %p1711_p13 = scmp.lt.s32.totalorder %s1705_s2, %s1705_s2 }
  0x20   :  { %p1712_p0 = por %p1711_p13, %p1710_p12 }
  0x22   :  { %p1713_p1 = pnand %p1712_p0, %p1706_p11 }
  0x24   :  { %1716 = shalt.err (!%p1713_p1)
}
  0x25   :  { %s1842_s22 = smov 64   ;;  %s1843_s29 = smov 4  }
  0x26   :  { %74 = dma.hbm_to_vmem [thread:$0]  %s2184_s5, 256, %s69_s18, [#allocation9], %s1842_s22, %s1842_s22, %s1843_s29  }
  0x27   :  { %s1717_s19 = scalar_lea.hbm %s2180_s1, 256 }
  0x28   :  { %p1718_p2 = scmp.ne.s32.totalorder %s2180_s1, %s1717_s19  ;;  %p1721_p3 = scmp.lt.u32.totalorder %s1717_s19, %s2180_s1 }
  0x2a   :  { %p1723_p4 = pnand %p1721_p3, %p1718_p2 }
  0x2c   :  { %1726 = shalt.err (!%p1723_p4)
}
  0x2d   :  { %s1727_s26 = scalar_lea.vmem %s31_s20, 256  ;;  %p1732_p6 = scmp.lt.s32.totalorder %s31_s20, %s31_s20 }
  0x2e   :  { %p1728_p5 = scmp.ne.s32.totalorder %s31_s20, %s1727_s26  ;;  %p1733_p7 = scmp.lt.s32.totalorder %s1727_s26, %s1727_s26 }
  0x30   :  { %p1734_p8 = por %p1733_p7, %p1732_p6 }
  0x32   :  { %p1735_p9 = pnand %p1734_p8, %p1728_p5 }
  0x34   :  { %1738 = shalt.err (!%p1735_p9)
}
  0x35   :  { %36 = dma.hbm_to_vmem [thread:$0]  %s2180_s1, 256, %s31_s20, [#allocation3], %s1838_s13, %s1838_s13, %s1839_s14  }
  0x36   :  { %s1844_s27 = smov [#allocation7]   ;;  %s1845_s2 = smov [#allocation10]  }
  0x37   :  { %s54_s28 = sshll.u32 %s1844_s27, 4  ;;  %s82_s30 = sshll.u32 %s1845_s2, 4  ;;  %s55_s28 = int_to_ptr.vmem [resolvable:$true] %s54_s28  ;;  %s83_s30 = int_to_ptr.vmem [resolvable:$true] %s82_s30 }
  0x38   :  { %s1739_s17 = scalar_lea.hbm %s2182_s3, 768 }
  0x39   :  { %p1740_p10 = scmp.ne.s32.totalorder %s2182_s3, %s1739_s17  ;;  %p1743_p11 = scmp.lt.u32.totalorder %s1739_s17, %s2182_s3 }
  0x3b   :  { %p1745_p12 = pnand %p1743_p11, %p1740_p10 }
  0x3d   :  { %1748 = shalt.err (!%p1745_p12)
}
  0x3e   :  { %s1749_s1 = scalar_lea.vmem %s55_s28, 768  ;;  %p1754_p0 = scmp.lt.s32.totalorder %s55_s28, %s55_s28 }
  0x3f   :  { %p1750_p13 = scmp.ne.s32.totalorder %s55_s28, %s1749_s1  ;;  %p1755_p1 = scmp.lt.s32.totalorder %s1749_s1, %s1749_s1 }
  0x41   :  { %p1756_p2 = por %p1755_p1, %p1754_p0 }
  0x43   :  { %p1757_p3 = pnand %p1756_p2, %p1750_p13 }
  0x45   :  { %1760 = shalt.err (!%p1757_p3)
}
  0x46   :  { %60 = dma.hbm_to_vmem [thread:$0]  %s2182_s3, 768, %s55_s28, [#allocation6], %s1842_s22, %s1842_s22, %s1843_s29  }
  0x47   :  { %s1761_s18 = scalar_lea.hbm %s2186_s7, 768 }
  0x48   :  { %p1762_p4 = scmp.ne.s32.totalorder %s2186_s7, %s1761_s18  ;;  %p1765_p5 = scmp.lt.u32.totalorder %s1761_s18, %s2186_s7 }
  0x4a   :  { %p1767_p6 = pnand %p1765_p5, %p1762_p4 }
  0x4c   :  { %1770 = shalt.err (!%p1767_p6)
}
  0x4d   :  { %s1771_s17 = scalar_lea.vmem %s83_s30, 768  ;;  %p1776_p8 = scmp.lt.s32.totalorder %s83_s30, %s83_s30 }
  0x4e   :  { %p1772_p7 = scmp.ne.s32.totalorder %s83_s30, %s1771_s17  ;;  %p1777_p9 = scmp.lt.s32.totalorder %s1771_s17, %s1771_s17 }
  0x50   :  { %p1778_p10 = por %p1777_p9, %p1776_p8 }
  0x52   :  { %p1779_p11 = pnand %p1778_p10, %p1772_p7 }
  0x54   :  { %1782 = shalt.err (!%p1779_p11)
}
  0x55   :  { %88 = dma.hbm_to_vmem [thread:$0]  %s2186_s7, 768, %s83_s30, [#allocation9], %s1842_s22, %s1842_s22, %s1843_s29  }
  0x56   :  { %s1846_s19 = smov [#allocation11]   ;;  %s1783_s1 = scalar_lea.hbm %s2188_s9, 256 }
  0x57   :  { %s96_s21 = sshll.u32 %s1846_s19, 4  ;;  %p1784_p12 = scmp.ne.s32.totalorder %s2188_s9, %s1783_s1  ;;  %s97_s21 = int_to_ptr.vmem [resolvable:$true] %s96_s21 }
  0x58   :  { %p1787_p13 = scmp.lt.u32.totalorder %s1783_s1, %s2188_s9 }
  0x5a   :  { %p1789_p0 = pnand %p1787_p13, %p1784_p12 }
  0x5c   :  { %1792 = shalt.err (!%p1789_p0)
}
  0x5d   :  { %s1793_s18 = scalar_lea.vmem %s97_s21, 256  ;;  %p1798_p2 = scmp.lt.s32.totalorder %s97_s21, %s97_s21 }
  0x5e   :  { %p1794_p1 = scmp.ne.s32.totalorder %s97_s21, %s1793_s18  ;;  %p1799_p3 = scmp.lt.s32.totalorder %s1793_s18, %s1793_s18 }
  0x60   :  { %p1800_p4 = por %p1799_p3, %p1798_p2 }
  0x62   :  { %p1801_p5 = pnand %p1800_p4, %p1794_p1 }
  0x64   :  { %1804 = shalt.err (!%p1801_p5)
}
  0x65   :  { %102 = dma.hbm_to_vmem [thread:$0]  %s2188_s9, 256, %s97_s21, [#allocation12], %s1842_s22, %s1842_s22, %s1843_s29  }
  0x66   :  { %1827 = dma.done.wait [#allocation3], 256  }
  0x67   :  { %1828 = vsyncadd [#allocation3], 4294967040 }
  0x68   :  { %1829 = dma.done.wait [#allocation6], 1024  }
  0x69   :  { %1830 = vsyncadd [#allocation6], 4294966272 }
  0x6a   :  { %1831 = dma.done.wait [#allocation9], 1024  }
  0x6b   :  { %1832 = vsyncadd [#allocation9], 4294966272 }
  0x6c   :  { %1833 = dma.done.wait [#allocation12], 256  }
  0x6d   :  { %1834 = vsyncadd [#allocation12], 4294967040  ;;  %v1847_v0 = vmov 0.0   ;;  %vm1848_vm0 = vmmov 0   ;;  %v1642_v1 = vld [vmem:[#allocation7] sm:$0xff]   ;;  %v1643_v2 = vld [vmem:[#allocation7 + $0x8] sm:$0xff]  }
  0x6e   :  { %1470 = vmatprep.subr.bf16.mxu0 %v1847_v0  ;;  %1474 = vmatprep.mubr.msk.bf16.mxu0 %vm1848_vm0, %v1847_v0  ;;  %v124_v3 = vld [vmem:[#allocation2] sm:$0xff]  ;;  %v125_v4 = vld [vmem:[#allocation2 + $0x8] sm:$0xff]  ;;  %vm144_vm1 = vcmask 261120   ;;  %vm197_vm2 = vcmask 130048   ;;  %v1645_v14 = vld [vmem:[#allocation7 + $0x10] sm:$0xff]  }
  0x6f   :  { %1478 = vmatprep.subr.bf16.mxu1 %v1847_v0  ;;  %1480 = vmatprep.mubr.msk.bf16.mxu1 %vm1848_vm0, %v1847_v0  ;;  %v126_v5 = vpack.c.bf16 %v125_v4, %v124_v3  ;;  %v1647_v6 = vld [vmem:[#allocation7 + $0x20] sm:$0xff]   ;;  %v1648_v7 = vld [vmem:[#allocation7 + $0x28] sm:$0xff]   ;;  %v1646_v15 = vld [vmem:[#allocation7 + $0x18] sm:$0xff]  }
  0x70   :  { %1471 = vmatpush3.bf16.msra.mxu0 %v1642_v1  ;;  %v2026_v13 = vld [vmem:[%s2179_s0] sm:$0xff]   ;;  %v2041_v26 = vld [vmem:[%s2179_s0 + $0x8] sm:$0xff]   ;;  %v2052_v27 = vld [vmem:[%s2179_s0 + $0x10] sm:$0xff]  }
  0x71   :  { %1472 = vmatprep.subr.bf16.mxu0 %v1847_v0  ;;  %v1651_v28 = vld [vmem:[#allocation8] sm:$0xff]   ;;  %v1652_v29 = vld [vmem:[#allocation8 + $0x8] sm:$0xff]   ;;  %v1376_v30 = vld [vmem:[%s2183_s4] ss:$0 sm:$0xff] }
  0x72   :  { %v1653_v38 = vld [vmem:[#allocation10] sm:$0xff]   ;;  %v1654_v39 = vld [vmem:[#allocation10 + $0x8] sm:$0xff]   ;;  %vm1592_vm3 = vmpackc.low %vm144_vm1, %vm144_vm1 }
  0x73   :  { %v1391_v40 = vld [vmem:[%s2185_s6] ss:$0 sm:$0xff] }
  0x74   :  { %1473 = vmatpush3.bf16.msra.mxu0 %v1643_v2 }
  0x75   :  { %1498 = vmatprep.subr.bf16.mxu0 %v1847_v0 }
  0x77   :  { %1475 = vmatmul.mubr.msk.bf16.vlgmr.msra.gmra.mrb[0].mxu0 %vm144_vm1, %v126_v5 }
  0x78   :  { %1502 = vmatprep.mubr.msk.bf16.mxu0 %vm1848_vm0, %v1847_v0  ;;  %1499 = vmatpush3.bf16.msra.mxu0 %v1647_v6 }
  0x79   :  { %1500 = vmatprep.subr.bf16.mxu0 %v1847_v0 }
  0x7c   :  { %1501 = vmatpush3.bf16.msra.mxu0 %v1648_v7 }
  0x7d   :  { %1512 = vmatprep.subr.bf16.mxu0 %v1847_v0 }
  0x7f   :  { %1503 = vmatmul.mubr.msk.bf16.vlgmr.msra.gmra.mrb[4].mxu0 %vm144_vm1, %v126_v5 }
  0x80   :  { %1516 = vmatprep.mubr.msk.bf16.mxu0 %vm1848_vm0, %v1847_v0  ;;  %1513 = vmatpush3.bf16.msra.mxu0 %v1651_v28 }
  0x81   :  { %1514 = vmatprep.subr.bf16.mxu0 %v1847_v0 }
  0x84   :  { %1515 = vmatpush3.bf16.msra.mxu0 %v1652_v29 }
  0x85   :  { %1520 = vmatprep.subr.bf16.mxu0 %v1847_v0 }
 0x14a   :  { %v182_v8 = vpop.f32.mrb[0].mxu0 }
 0x14b   :  { %v1476_v9 = vpop.f32.mrb[1].mxu0 }
 0x14c   :  { %v185_v10 = vpop.f32.mrb[2].mxu0 }
 0x14d   :  { %v191_v11 = vpack.c.bf16 %v185_v10, %v182_v8  ;;  %v1477_v12 = vpop.f32.mrb[3].mxu0 }
 0x14f   :  { %1479 = vmatpush3.bf16.msra.mxu1 %v191_v11 }
 0x150   :  { %1484 = vmatprep.subr.bf16.mxu1 %v1847_v0 }
 0x152   :  { %1481 = vmatmul.mubr.msk.bf16.vlgmr.msra.gmra.mrb[0].mxu1 %vm197_vm2, %v2026_v13  ;;  %v414_v16 = vpop.f32.mrb[4].mxu0 }
 0x153   :  { %1485 = vmatpush3.bf16.msra.mxu1 %v1645_v14  ;;  %1488 = vmatprep.mubr.msk.bf16.mxu1 %vm1848_vm0, %v1847_v0  ;;  %v1504_v17 = vpop.f32.mrb[5].mxu0 }
 0x154   :  { %1486 = vmatprep.subr.bf16.mxu1 %v1847_v0  ;;  %v417_v18 = vpop.f32.mrb[6].mxu0  ;;  %v1656_v17 = vld [vmem:[#allocation10 + $0x18] sm:$0xff]  }
 0x155   :  { %v424_v19 = vpack.c.bf16 %v417_v18, %v414_v16  ;;  %v1505_v20 = vpop.f32.mrb[7].mxu0  ;;  %v1657_v18 = vld [vmem:[#allocation10 + $0x20] sm:$0xff]  }
 0x157   :  { %1487 = vmatpush3.bf16.msra.mxu1 %v1646_v15  ;;  %v1655_v15 = vld [vmem:[#allocation10 + $0x10] sm:$0xff]  }
 0x158   :  { %1492 = vmatprep.subr.bf16.mxu1 %v1847_v0 }
 0x15a   :  { %1489 = vmatmul.mubr.msk.bf16.vlgmr.msra.gmra.mrb[4].mxu1 %vm144_vm1, %v126_v5 }
 0x15b   :  { %1494 = vmatprep.mubr.msk.bf16.mxu1 %vm1848_vm0, %v1847_v0 }
 0x22d   :  { %v301_v21 = vpop.f32.mrb[4].mxu1 }
 0x22e   :  { %v1490_v22 = vpop.f32.mrb[5].mxu1 }
 0x22f   :  { %v304_v23 = vpop.f32.mrb[6].mxu1 }
 0x230   :  { %v311_v24 = vpack.c.bf16 %v304_v23, %v301_v21  ;;  %v1491_v25 = vpop.f32.mrb[7].mxu1 }
 0x232   :  { %1493 = vmatpush3.bf16.msra.mxu1 %v311_v24 }
 0x233   :  { %1506 = vmatprep.subr.bf16.mxu1 %v1847_v0 }
 0x235   :  { %1495 = vmatmul.mubr.msk.bf16.vlgmr.msra.gmra.mrb[0].mxu1 %vm197_vm2, %v2041_v26 }
 0x236   :  { %1507 = vmatpush3.bf16.msra.mxu1 %v424_v19  ;;  %1508 = vmatprep.mubr.msk.bf16.mxu1 %vm1848_vm0, %v1847_v0  ;;  %v1658_v19 = vld [vmem:[#allocation10 + $0x28] sm:$0xff]  }
 0x237   :  { %1528 = vmatprep.subr.bf16.mxu1 %v1847_v0 }
 0x241   :  { %1509 = vmatmul.mubr.msk.bf16.vlgmr.msra.gmra.mrb[0].mxu1 %vm197_vm2, %v2052_v27 }
 0x242   :  { %1530 = vmatprep.mubr.msk.bf16.mxu1 %vm1848_vm0, %v1847_v0 }
 0x314   :  { %v467_v31 = vpop.f32.mrb[0].mxu1 }
 0x315   :  { %v1510_v32 = vpop.f32.mrb[1].mxu1  ;;  %v1605_v34 = vadd.f32 %v1376_v30, %v467_v31 }
 0x316   :  { %v470_v33 = vpop.f32.mrb[2].mxu1 }
 0x317   :  { %v1606_v35 = vadd.f32 %v1376_v30, %v470_v33  ;;  %v1511_v36 = vpop.f32.mrb[3].mxu1 }
 0x319   :  { %v476_v37 = vpack.c.bf16 %v1606_v35, %v1605_v34 }
 0x31b   :  { %1517 = vmatmul.mubr.msk.bf16.vlgmr.msra.gmra.mrb[8].mxu0 %vm144_vm1, %v476_v37  ;;  %v1660_v37 = vld [vmem:[#allocation11 + $0x8] sm:$0xff]  }
 0x31c   :  { %1524 = vmatprep.mubr.msk.bf16.mxu0 %vm1848_vm0, %v1847_v0  ;;  %1521 = vmatpush3.bf16.msra.mxu0 %v1653_v38  ;;  %v1399_v38 = vld [vmem:[%s2187_s8] ss:$0 sm:$0xff] }
 0x31d   :  { %1522 = vmatprep.subr.bf16.mxu0 %v1847_v0 }
 0x320   :  { %1523 = vmatpush3.bf16.msra.mxu0 %v1654_v39 }
 0x321   :  { %1534 = vmatprep.subr.bf16.mxu0 %v1847_v0 }
 0x3ee   :  { %v537_v41 = vpop.f32.mrb[8].mxu0 }
 0x3ef   :  { %v538_v42 = vadd.f32 %v1391_v40, %v537_v41  ;;  %v1518_v43 = vpop.f32.mrb[9].mxu0 }
 0x3f0   :  { %v540_v44 = vpop.f32.mrb[10].mxu0 }
 0x3f1   :  { %v544_v45 = vmax.f32 %v538_v42, 0.0  ;;  %v541_v46 = vadd.f32 %v1391_v40, %v540_v44  ;;  %v1519_v47 = vpop.f32.mrb[11].mxu0 }
 0x3f2   :  { %v2112_v47 = vld [vmem:[#allocation5 + $0x8] sm:$0xff] }
 0x3f3   :  { %v545_v48 = vmax.f32 %v541_v46, 0.0  ;;  %v546_v49 = vsel %vm144_vm1, %v544_v45, 0.0 }
 0x3f5   :  { %v547_v50 = vsel %vm144_vm1, %v545_v48, 0.0 }
 0x3f6   :  { %v548_v51 = vadd.f32 %v547_v50, %v546_v49  ;;  %v1408_v50 = vld [vmem:[%s2189_s10] ss:$0 sm:$0xff]  ;;  %s1851_s10 = smov [#allocation13]  }
 0x3f7   :  { %s1352_s19 = sshll.u32 %s1851_s10, 4  ;;  %s1353_s19 = int_to_ptr.vmem [resolvable:$true] %s1352_s19 }
 0x3f8   :  { %v549_v52 = vrot.slane %v548_v51, 4  ;;  %s1805_s21 = scalar_lea.vmem %s1353_s19, 256  ;;  %p1810_p7 = scmp.lt.s32.totalorder %s1353_s19, %s1353_s19 }
 0x3f9   :  { %p1806_p6 = scmp.ne.s32.totalorder %s1353_s19, %s1805_s21  ;;  %p1811_p8 = scmp.lt.s32.totalorder %s1805_s21, %s1805_s21 }
 0x3fa   :  { %v550_v53 = vadd.f32 %v549_v52, %v548_v51 }
 0x3fb   :  { %p1812_p9 = por %p1811_p8, %p1810_p7 }
 0x3fc   :  { %v551_v54 = vrot.slane %v550_v53, 2 }
 0x3fd   :  { %p1813_p10 = pnand %p1812_p9, %p1806_p6 }
 0x3fe   :  { %v552_v55 = vadd.f32 %v551_v54, %v550_v53 }
 0x400   :  { %v553_v56 = vrot.slane %v552_v55, 1 }
 0x402   :  { %v554_v57 = vadd.f32 %v553_v56, %v552_v55 }
 0x404   :  { %v556_v58 = vmul.f32 0.0625, %v554_v57 }
 0x406   :  { %v557_v59 = vsub.f32 %v544_v45, %v556_v58  ;;  %v558_v60 = vsub.f32 %v545_v48, %v556_v58  ;;  %v1008_v48 = vmul.f32 %v2112_v47, %v2112_v47 }
 0x408   :  { %v559_v61 = vmul.f32 %v557_v59, %v557_v59  ;;  %v560_v62 = vmul.f32 %v558_v60, %v558_v60  ;;  %v1012_v49 = vsel %vm144_vm1, %v1008_v48, 0.0 }
 0x40a   :  { %v561_v63 = vsel %vm144_vm1, %v559_v61, 0.0  ;;  %v562_v1 = vsel %vm144_vm1, %v560_v62, 0.0 }
 0x40b   :  { %v563_v2 = vadd.f32 %v562_v1, %v561_v63 }
 0x40d   :  { %v564_v3 = vrot.slane %v563_v2, 4 }
 0x40f   :  { %v565_v4 = vadd.f32 %v564_v3, %v563_v2 }
 0x411   :  { %v566_v5 = vrot.slane %v565_v4, 2 }
 0x413   :  { %v567_v6 = vadd.f32 %v566_v5, %v565_v4 }
 0x415   :  { %v568_v7 = vrot.slane %v567_v6, 1 }
 0x417   :  { %v569_v8 = vadd.f32 %v568_v7, %v567_v6 }
 0x419   :  { %v570_v9 = vmul.f32 0.0625, %v569_v8 }
 0x41b   :  { %v571_v10 = vadd.f32 1e-05, %v570_v9 }
 0x41d   :  { %1661 = vrsqrt.f32 %v571_v10 }
 0x427   :  { %v1662_v11 = vpop.eup %1661 }
 0x428   :  { %v573_v12 = vmul.f32 %v1662_v11, %v557_v59  ;;  %v574_v14 = vmul.f32 %v1662_v11, %v558_v60 }
 0x42a   :  { %v575_v16 = vpack.c.bf16 %v574_v14, %v573_v12 }
 0x42c   :  { %1525 = vmatmul.mubr.msk.bf16.vlgmr.msra.gmra.mrb[12].mxu0 %vm144_vm1, %v575_v16 }
 0x42d   :  { %1535 = vmatpush3.bf16.msra.mxu0 %v1655_v15  ;;  %1538 = vmatprep.mubr.msk.bf16.mxu0 %vm1848_vm0, %v1847_v0 }
 0x42e   :  { %1536 = vmatprep.subr.bf16.mxu0 %v1847_v0 }
 0x431   :  { %1537 = vmatpush3.bf16.msra.mxu0 %v1656_v17 }
 0x432   :  { %1548 = vmatprep.subr.bf16.mxu0 %v1847_v0 }
 0x434   :  { %1539 = vmatmul.mubr.msk.bf16.vlgmr.msra.gmra.mrb[16].mxu0 %vm144_vm1, %v575_v16 }
 0x435   :  { %1549 = vmatpush3.bf16.msra.mxu0 %v1657_v18  ;;  %1552 = vmatprep.mubr.msk.bf16.mxu0 %vm1848_vm0, %v1847_v0 }
 0x436   :  { %1550 = vmatprep.subr.bf16.mxu0 %v1847_v0 }
 0x439   :  { %1551 = vmatpush3.bf16.msra.mxu0 %v1658_v19 }
 0x43a   :  { %1562 = vmatprep.subr.bf16.mxu0 %v1847_v0 }
 0x43c   :  { %1553 = vmatmul.mubr.msk.bf16.vlgmr.msra.gmra.mrb[20].mxu0 %vm144_vm1, %v575_v16 }
 0x43d   :  { %1566 = vmatprep.mubr.msk.bf16.mxu0 %vm1848_vm0, %v1847_v0 }
 0x4ff   :  { %v630_v20 = vpop.f32.mrb[12].mxu0 }
 0x500   :  { %v1526_v21 = vpop.f32.mrb[13].mxu0 }
 0x501   :  { %v633_v22 = vpop.f32.mrb[14].mxu0 }
 0x502   :  { %v637_v23 = vpack.c.bf16 %v633_v22, %v630_v20  ;;  %v1527_v24 = vpop.f32.mrb[15].mxu0 }
 0x504   :  { %1529 = vmatpush3.bf16.msra.mxu1 %v637_v23 }
 0x505   :  { %1542 = vmatprep.subr.bf16.mxu1 %v1847_v0 }
 0x507   :  { %1531 = vmatmul.mubr.msk.bf16.vlgmr.msra.gmra.mrb[8].mxu1 %vm197_vm2, %v2026_v13  ;;  %v738_v25 = vpop.f32.mrb[16].mxu0  ;;  %v1659_v13 = vld [vmem:[#allocation11] sm:$0xff]  }
 0x508   :  { %v1540_v28 = vpop.f32.mrb[17].mxu0  ;;  %1544 = vmatprep.mubr.msk.bf16.mxu1 %vm1848_vm0, %v1847_v0  ;;  %1563 = vmatpush3.bf16.msra.mxu0 %v1659_v13 }
 0x509   :  { %v741_v29 = vpop.f32.mrb[18].mxu0  ;;  %1564 = vmatprep.subr.bf16.mxu0 %v1847_v0 }
 0x50a   :  { %v745_v30 = vpack.c.bf16 %v741_v29, %v738_v25  ;;  %v1541_v31 = vpop.f32.mrb[19].mxu0 }
 0x50c   :  { %1543 = vmatpush3.bf16.msra.mxu1 %v745_v30  ;;  %1565 = vmatpush3.bf16.msra.mxu0 %v1660_v37 }
 0x50d   :  { %1556 = vmatprep.subr.bf16.mxu1 %v1847_v0 }
 0x50f   :  { %v840_v32 = vpop.f32.mrb[20].mxu0 }
 0x510   :  { %v1554_v33 = vpop.f32.mrb[21].mxu0 }
 0x511   :  { %v843_v34 = vpop.f32.mrb[22].mxu0 }
 0x512   :  { %v847_v35 = vpack.c.bf16 %v843_v34, %v840_v32  ;;  %v1555_v36 = vpop.f32.mrb[23].mxu0 }
 0x513   :  { %1545 = vmatmul.mubr.msk.bf16.vlgmr.msra.gmra.mrb[8].mxu1 %vm197_vm2, %v2041_v26 }
 0x514   :  { %1557 = vmatpush3.bf16.msra.mxu1 %v847_v35  ;;  %1558 = vmatprep.mubr.msk.bf16.mxu1 %vm1848_vm0, %v1847_v0 }
 0x51f   :  { %1559 = vmatmul.mubr.msk.bf16.vlgmr.msra.gmra.mrb[8].mxu1 %vm197_vm2, %v2052_v27  ;;  %v2107_v27 = vld [vmem:[#allocation5] sm:$0xff] }
 0x520   :  { %v1007_v45 = vmul.f32 %v2107_v27, %v2107_v27 }
 0x522   :  { %v1009_v46 = vsel %vm144_vm1, %v1007_v45, 0.0 }
 0x523   :  { %1010 = vadd.xlane.f32.xlu0 %v1009_v46 }
 0x527   :  { %1013 = vadd.xlane.f32.xlu0 %v1012_v49 }
 0x5b0   :  { %v1011_v28 = vpop.xlane.xlu0 %1010 }
 0x5b1   :  { %v1015_v31 = vmax.f32 %v1011_v28, 1e-24 }
 0x5b4   :  { %v1014_v32 = vpop.xlane.xlu0 %1013 }
 0x5b5   :  { %v1016_v34 = vmax.f32 %v1014_v32, 1e-24 }
 0x5f2   :  { %v882_v39 = vpop.f32.mrb[8].mxu1 }
 0x5f3   :  { %v1560_v40 = vpop.f32.mrb[9].mxu1  ;;  %v1607_v41 = vadd.f32 %v1399_v38, %v882_v39 }
 0x5f4   :  { %v885_v26 = vpop.f32.mrb[10].mxu1 }
 0x5f5   :  { %v1608_v42 = vadd.f32 %v1399_v38, %v885_v26  ;;  %v1561_v43 = vpop.f32.mrb[11].mxu1  ;;  %v1849_v26 = vmov 0.0|0.0  }
 0x5f6   :  { %1597 = vmatprep.subr.bf16.mxu0 %v1849_v26 }
 0x5f7   :  { %v891_v44 = vpack.c.bf16 %v1608_v42, %v1607_v41  ;;  %v1850_v42 = vmov 1.0  }
 0x5f9   :  { %1567 = vmatmul.mubr.msk.bf16.vlgmr.msra.gmra.mrb[24].mxu0 %vm144_vm1, %v891_v44 }
 0x5fa   :  { %1581 = vmatprep.mubr.msk.f32.mxu0 %vm1848_vm0, %v1847_v0 }
 0x6cc   :  { %v952_v51 = vpop.f32.mrb[24].mxu0 }
 0x6cd   :  { %v953_v52 = vadd.f32 %v1408_v50, %v952_v51  ;;  %v1568_v53 = vpop.f32.mrb[25].mxu0 }
 0x6ce   :  { %v955_v54 = vpop.f32.mrb[26].mxu0 }
 0x6cf   :  { %v959_v55 = vmax.f32 %v953_v52, 0.0  ;;  %v956_v56 = vadd.f32 %v1408_v50, %v955_v54  ;;  %v1569_v57 = vpop.f32.mrb[27].mxu0  ;;  %v1191_v54 = vlaneseq }
 0x6d1   :  { %v960_v58 = vmax.f32 %v956_v56, 0.0  ;;  %v961_v59 = vsel %vm144_vm1, %v959_v55, 0.0 }
 0x6d3   :  { %v962_v60 = vsel %vm144_vm1, %v960_v58, 0.0 }
 0x6d4   :  { %v963_v61 = vadd.f32 %v962_v60, %v961_v59 }
 0x6d6   :  { %v964_v62 = vrot.slane %v963_v61, 4 }
 0x6d8   :  { %v965_v63 = vadd.f32 %v964_v62, %v963_v61 }
 0x6da   :  { %v966_v1 = vrot.slane %v965_v63, 2 }
 0x6dc   :  { %v967_v2 = vadd.f32 %v966_v1, %v965_v63 }
 0x6de   :  { %v968_v3 = vrot.slane %v967_v2, 1 }
 0x6e0   :  { %v969_v4 = vadd.f32 %v968_v3, %v967_v2  ;;  %v1198_v3 = vand.u32 127, %v1191_v54 }
 0x6e2   :  { %v970_v5 = vmul.f32 0.0625, %v969_v4 }
 0x6e4   :  { %v971_v6 = vsub.f32 %v959_v55, %v970_v5  ;;  %v972_v7 = vsub.f32 %v960_v58, %v970_v5  ;;  %v1192_v55 = vshrl.u32 %v1191_v54, 7 }
 0x6e6   :  { %v973_v8 = vmul.f32 %v971_v6, %v971_v6  ;;  %v974_v9 = vmul.f32 %v972_v7, %v972_v7  ;;  %v1193_v56 = vsub.s32 0, %v1192_v55 }
 0x6e8   :  { %v975_v10 = vsel %vm144_vm1, %v973_v8, 0.0  ;;  %v976_v11 = vsel %vm144_vm1, %v974_v9, 0.0 }
 0x6e9   :  { %v977_v12 = vadd.f32 %v976_v11, %v975_v10 }
 0x6eb   :  { %v978_v14 = vrot.slane %v977_v12, 4 }
 0x6ed   :  { %v979_v15 = vadd.f32 %v978_v14, %v977_v12 }
 0x6ef   :  { %v980_v16 = vrot.slane %v979_v15, 2 }
 0x6f1   :  { %v981_v17 = vadd.f32 %v980_v16, %v979_v15 }
 0x6f3   :  { %v982_v18 = vrot.slane %v981_v17, 1 }
 0x6f5   :  { %v983_v19 = vadd.f32 %v982_v18, %v981_v17 }
 0x6f7   :  { %v984_v20 = vmul.f32 0.0625, %v983_v19 }
 0x6f9   :  { %v985_v21 = vadd.f32 1e-05, %v984_v20 }
 0x6fb   :  { %1663 = vrsqrt.f32 %v985_v21 }
 0x6fc   :  { %1665 = vrsqrt.f32 %v1015_v31 }
 0x6fd   :  { %1667 = vrsqrt.f32 %v1016_v34 }
 0x705   :  { %v1664_v22 = vpop.eup %1663 }
 0x706   :  { %v2124_v23 = vmul.f32 %v1664_v22, %v971_v6  ;;  %v2126_v24 = vmul.f32 %v1664_v22, %v972_v7  ;;  %v1666_v35 = vpop.eup %1665 }
 0x707   :  { %v1668_v36 = vpop.eup %1667  ;;  %v1019_v13 = vmul.f32 %v1666_v35, %v2107_v27 }
 0x708   :  { %989 = vst.msk [vmem:[#allocation13] sm:$0xff] %vm144_vm1, %v2124_v23  ;;  %990 = vst.msk [vmem:[#allocation13 + $0x8] sm:$0xff] %vm144_vm1, %v2126_v24  ;;  %v993_v25 = vmul.f32 %v2124_v23, %v2124_v23  ;;  %v994_v30 = vmul.f32 %v2126_v24, %v2126_v24  ;;  %v1020_v37 = vmul.f32 %v1668_v36, %v2112_v47 }
 0x709   :  { %v1108_v39 = vmul.f32 %v1019_v13, %v1019_v13 }
 0x70a   :  { %v995_v29 = vsel %vm144_vm1, %v993_v25, 0.0  ;;  %v998_v33 = vsel %vm144_vm1, %v994_v30, 0.0  ;;  %v1591_v38 = vpack.c.bf16 %v1020_v37, %v1019_v13  ;;  %v1109_v40 = vmul.f32 %v1020_v37, %v1020_v37 }
 0x70b   :  { %996 = vadd.xlane.f32.xlu1 %v995_v29  ;;  %v1601_v25 = vpack.c.bf16 %v2112_v47, %v2107_v27 }
 0x70c   :  { %1593 = vmatprep.subr.msk.bf16.mxu1 %vm1592_vm3, %v1591_v38  ;;  %v1598_v41 = vpack.c.bf16 %v1109_v40, %v1108_v39 }
 0x70d   :  { %1596 = vmatpush3.bf16.xpose.msk.msra.mxu1 %vm1592_vm3, %v1591_v38 }
 0x70e   :  { %1600 = vmatpush3.bf16.xpose.msk.msra.mxu0 %vm1592_vm3, %v1598_v41  ;;  %1602 = vmatprep.subr.bf16.mxu1 %v1601_v25 }
 0x70f   :  { %999 = vadd.xlane.f32.xlu1 %v998_v33 }
 0x715   :  { %1582 = vmatmul.mubr.msk.f32.vlgmr.msra.gmra.mrb[28].mxu0 %vm144_vm1, %v1850_v42 }
 0x798   :  { %v997_v43 = vpop.xlane.xlu1 %996 }
 0x799   :  { %v1001_v44 = vmax.f32 %v997_v43, 1e-24 }
 0x79b   :  { %1669 = vrsqrt.f32 %v1001_v44 }
 0x79c   :  { %v1000_v45 = vpop.xlane.xlu1 %999 }
 0x79d   :  { %v1002_v46 = vmax.f32 %v1000_v45, 1e-24 }
 0x79f   :  { %1671 = vrsqrt.f32 %v1002_v46 }
 0x7a5   :  { %v1670_v48 = vpop.eup %1669 }
 0x7a6   :  { %v1005_v49 = vmul.f32 %v1670_v48, %v2124_v23 }
 0x7a8   :  { %1574 = vmatprep.mubr.msk.f32.mxu1 %vm144_vm1, %v1005_v49 }
 0x7a9   :  { %v1672_v50 = vpop.eup %1671 }
 0x7aa   :  { %v1006_v51 = vmul.f32 %v1672_v50, %v2126_v24 }
 0x7ac   :  { %1575 = vmatmul.mubr.msk.f32.vlgmr.msra.gmra.mrb[12].mxu1 %vm144_vm1, %v1006_v51 }
 0x7ad   :  { %1604 = vmatpush3.bf16.msra.mxu1 %v1601_v25 }
 0x7e8   :  { %v1185_v52 = vpop.f32.mrb[28].mxu0 }
 0x7e9   :  { %v1583_v53 = vpop.f32.mrb[29].mxu0  ;;  %v1194_v57 = vrot.slane %v1185_v52, %v1193_v56 }
 0x87f   :  { %v1576_v58 = vpop.f32.mrb[12].mxu1 }
 0x880   :  { %v1190_v59 = vmul.f32 2.0, %v1576_v58  ;;  %v1099_v60 = vpop.f32.mrb[13].mxu1 }
 0x881   :  { %v1189_v61 = vmul.f32 2.0, %v1099_v60 }
 0x882   :  { %v1196_v62 = vsub.f32 %v1194_v57, %v1190_v59 }
 0x883   :  { %v1195_v63 = vsub.f32 %v1194_v57, %v1189_v61 }
 0x884   :  { %v1202_v1 = vsel %vm197_vm2, %v1196_v62, inf }
 0x885   :  { %1203 = vmin.xlane.f32.xlu1 %v1202_v1  ;;  %v1199_v2 = vsel %vm197_vm2, %v1195_v63, inf }
 0x886   :  { %1200 = vmin.xlane.f32.xlu0 %v1199_v2 }
 0x912   :  { %v1204_v4 = vpop.xlane.xlu1 %1203 }
 0x913   :  { %vm1206_vm4 = vcmp.eq.f32.partialorder %v1196_v62, %v1204_v4  ;;  %v1201_v5 = vpop.xlane.xlu0 %1200 }
 0x914   :  { %v1208_v6 = vsel %vm1206_vm4, %v1198_v3, 16  ;;  %vm1205_vm5 = vcmp.eq.f32.partialorder %v1195_v63, %v1201_v5 }
 0x915   :  { %v1224_v7 = vsel %vm197_vm2, %v1208_v6, 2147483647  ;;  %v1207_v8 = vsel %vm1205_vm5, %v1198_v3, 16 }
 0x916   :  { %v1209_v9 = vsel %vm197_vm2, %v1207_v8, 2147483647  ;;  %v1226_v10 = vshra.s32 %v1224_v7, 16  ;;  %v1225_v15 = vand.u32 65535, %v1224_v7 }
 0x917   :  { %v1211_v11 = vshra.s32 %v1209_v9, 16  ;;  %v1210_v16 = vand.u32 65535, %v1209_v9 }
 0x918   :  { %v1228_v12 = vcvt.s32.f32 %v1226_v10  ;;  %v1227_v18 = vcvt.s32.f32 %v1225_v15 }
 0x919   :  { %v1213_v14 = vcvt.s32.f32 %v1211_v11  ;;  %v1212_v20 = vcvt.s32.f32 %v1210_v16 }
 0x91a   :  { %1229 = vmin.xlane.f32.xlu1 %v1228_v12 }
 0x91b   :  { %1214 = vmin.xlane.f32.xlu0 %v1213_v14 }
 0x9a7   :  { %v1230_v17 = vpop.xlane.xlu1 %1229 }
 0x9a8   :  { %v1215_v19 = vpop.xlane.xlu0 %1214  ;;  %vm1231_vm6 = vcmp.eq.f32.partialorder %v1228_v12, %v1230_v17  ;;  %v1236_v28 = vcvt.f32.s32 %v1230_v17 }
 0x9a9   :  { %v1232_v21 = vsel %vm1231_vm6, %v1227_v18, inf  ;;  %vm1216_vm7 = vcmp.eq.f32.partialorder %v1213_v14, %v1215_v19  ;;  %v1221_v29 = vcvt.f32.s32 %v1215_v19 }
 0x9aa   :  { %1233 = vmin.xlane.f32.xlu1 %v1232_v21  ;;  %v1217_v22 = vsel %vm1216_vm7, %v1212_v20, inf  ;;  %v1237_v31 = vshll.u32 %v1236_v28, 16 }
 0x9ab   :  { %1218 = vmin.xlane.f32.xlu0 %v1217_v22  ;;  %v1222_v34 = vshll.u32 %v1221_v29, 16 }
 0xa37   :  { %v1234_v30 = vpop.xlane.xlu1 %1233 }
 0xa38   :  { %v1235_v32 = vcvt.f32.s32 %v1234_v30  ;;  %v1219_v33 = vpop.xlane.xlu0 %1218 }
 0xa39   :  { %v1220_v35 = vcvt.f32.s32 %v1219_v33 }
 0xa3a   :  { %v1238_v36 = vadd.s32 %v1237_v31, %v1235_v32 }
 0xa3b   :  { %v1223_v13 = vadd.s32 %v1222_v34, %v1220_v35 }
 0xa3c   :  { %vm1240_vm8 = vcmp.eq.s32.totalorder %v1198_v3, %v1238_v36 }
 0xa3d   :  { %vm1239_vm9 = vcmp.eq.s32.totalorder %v1198_v3, %v1223_v13  ;;  %v1420_v38 = vsel %vm1240_vm8, 1.0, %v1847_v0 }
 0xa3e   :  { %v1419_v37 = vsel %vm1239_vm9, 1.0, %v1847_v0 }
 0xa3f   :  { %1588 = vmatprep.mubr.msk.f32.mxu1 %vm197_vm2, %v1419_v37 }
 0xa40   :  { %1589 = vmatmul.mubr.msk.f32.vlgmr.msra.gmra.mrb[14].mxu1 %vm197_vm2, %v1420_v38 }
 0xb13   :  { %v1590_v27 = vpop.f32.mrb[14].mxu1 }
 0xb14   :  { %v1327_v47 = vsub.f32 %v1590_v27, %v2126_v24  ;;  %v1317_v39 = vpop.f32.mrb[15].mxu1 }
 0xb15   :  { %v1326_v40 = vsub.f32 %v1317_v39, %v2124_v23 }
 0xb16   :  { %v1329_v26 = vmul.f32 %v1327_v47, %v1327_v47 }
 0xb17   :  { %v1328_v41 = vmul.f32 %v1326_v40, %v1326_v40 }
 0xb18   :  { %v1331_v42 = vsel %vm144_vm1, %v1329_v26, 0.0 }
 0xb19   :  { %v1330_v43 = vsel %vm144_vm1, %v1328_v41, 0.0 }
 0xb1a   :  { %v1332_v44 = vadd.f32 %v1331_v42, %v1330_v43 }
 0xb1c   :  { %1333 = vadd.xlane.f32.xlu0 %v1332_v44 }
 0xb1d   :  { %1816 = shalt.err (!%p1813_p10)
}
 0xb1e   :  { %s1817_s1 = scalar_lea.hbm %s2190_s11, 256 }
 0xb1f   :  { %p1818_p11 = scmp.ne.s32.totalorder %s2190_s11, %s1817_s1  ;;  %p1821_p12 = scmp.lt.u32.totalorder %s1817_s1, %s2190_s11 }
 0xb21   :  { %p1823_p13 = pnand %p1821_p12, %p1818_p11 }
 0xb23   :  { %1826 = shalt.err (!%p1823_p13)
}
 0xb24   :  { %1358 = dma.vmem_to_hbm [thread:$0]  %s1353_s19, 256, %s2190_s11, [#allocation4], %s1838_s13, %s1838_s13, %s1839_s14  }
 0xba9   :  { %v1334_v0 = vpop.xlane.xlu0 %1333 }
 0xbaa   :  { %v1335_v23 = vrot.slane %v1334_v0, 4 }
 0xbac   :  { %v1336_v24 = vadd.f32 %v1335_v23, %v1334_v0 }
 0xbae   :  { %v1337_v45 = vrot.slane %v1336_v24, 2 }
 0xbb0   :  { %v1338_v46 = vadd.f32 %v1337_v45, %v1336_v24 }
 0xbb2   :  { %v1339_v48 = vrot.slane %v1338_v46, 1 }
 0xbb4   :  { %v1340_v49 = vadd.f32 %v1339_v48, %v1338_v46 }
 0xbb6   :  { %1625 = vpush %v1340_v49 }
 0xbe7   :  { %s1626_s30 = spop %1625 }
 0xbe8   :  { %s1344_s9 = smul.f32 0.001953125, %s1626_s30 }
 0xbea   :  { %v1345_v50 = vstv %s1344_s9 }
 0xbeb   :  { %1346 = vst [vmem:[%s2191_s12] sm:$0xff] %v1345_v50 }
 0xbec   :  { %1835 = dma.done.wait [#allocation4], 256  }
 0xbed   :  { %1836 = vsyncadd [#allocation4], 4294967040 }
 0xbee   :  { %1366 = vsyncpa [#allocation3], 1 }
 0xbef   :  { %1367 = vsyncpa [#allocation6], 1 }
 0xbf0   :  { %1368 = vsyncpa [#allocation9], 1 }
 0xbf1   :  { %1369 = vsyncpa [#allocation12], 1 }
 0xbf2   :  { %1370 = vsyncpa [#allocation4], 1 }

</bundles_post_ra>
